<compile_context>
chip_gen: v5e
topology: v5e:2x2
jax: 0.10.0
libtpu: 0.0.40
codegen_flags: <defaults>
</compile_context>

<pallas_src>
import functools

import jax
import jax.numpy as jnp
from jax.experimental import pallas as pl
from jax.experimental.pallas import tpu as pltpu

_LANES = 128
_SUBLANES = 8
_MAX_TILE_ROWS = 4096   # 4096 * 128 * 4 B = 2 MiB per f32 input tile (x2 inputs x2 buffers = 8 MiB)


def _cdiv(a, b):
    return -(-a // b)


def _round_up(a, b):
    return _cdiv(a, b) * b


def _masked_smooth_l1_kernel(p_ref, t_ref, sum_ref, cnt_ref, *, ignore_val):
    """Per-block partial reduction.

    p_ref, t_ref : (K, 8, 128) tiles of prediction / resized target (native dtype).
    sum_ref      : (1, 8, 128) f32 -- lane-wise partial sum of masked smooth-L1.
    cnt_ref      : (1, 8, 128) f32 -- lane-wise partial count of unmasked elements.
    """
    t_nat = t_ref[...]
    p = p_ref[...].astype(jnp.float32)
    t = t_nat.astype(jnp.float32)

    d = p - t
    ad = jnp.abs(d)
    # F.smooth_l1_loss (beta = 1.0): 0.5*d^2 if |d| < 1 else |d| - 0.5
    l = jnp.where(ad < 1.0, 0.5 * d * d, ad - 0.5)

    # Mask in the target's native dtype so the ignore-value padding (written in the
    # same dtype by the wrapper) is guaranteed to compare equal.
    mask = t_nat != jnp.asarray(ignore_val, dtype=t_nat.dtype)
    lm = jnp.where(mask, l, jnp.float32(0.0))
    mf = mask.astype(jnp.float32)

    # Reduce only over the leading (vreg-group) axis: pure VPU adds, stays lane-dense,
    # and the (8,128) output block keeps the store path unmasked/full-width.
    sum_ref[0] = jnp.sum(lm, axis=0)
    cnt_ref[0] = jnp.sum(mf, axis=0)


def nearest_resize(target, h, w):
    # Matches F.interpolate(mode='nearest'): src_idx = floor(dst_idx * in / out)
    _, _, H, W = target.shape
    rows = (jnp.arange(h) * H) // h
    cols = (jnp.arange(w) * W) // w
    return target[:, :, rows, :][:, :, :, cols]


def _fused_masked_smooth_l1(flat_preds, flat_tgts, ignore_val):
    """One fused pallas_call over all scales.

    Returns per-scale (sum of masked smooth-l1, count of unmasked elements).
    """
    n_elems = [int(fp.size) for fp in flat_preds]

    # Row tile: sized from the largest scale, capped for VMEM (safe on v7x's 64 MiB too).
    max_rows = max(_cdiv(n, _LANES) for n in n_elems)
    tile_rows = min(_MAX_TILE_ROWS, _round_up(max_rows, _SUBLANES))
    tile_elems = tile_rows * _LANES
    K = tile_rows // _SUBLANES

    # Pad each scale to a whole number of tiles (target padded with the ignore value
    # so padded elements are masked out) and concatenate into one lane-dense buffer.
    p_parts, t_parts, blocks = [], [], []
    for fp, ft, n in zip(flat_preds, flat_tgts, n_elems):
        nblk = max(1, _cdiv(n, tile_elems))
        pad = nblk * tile_elems - n
        p_parts.append(jnp.pad(fp, (0, pad)))
        t_parts.append(jnp.pad(ft, (0, pad), constant_values=ignore_val))
        blocks.append(nblk)

    num_blocks = sum(blocks)
    p_all = jnp.concatenate(p_parts).reshape(num_blocks * K, _SUBLANES, _LANES)
    t_all = jnp.concatenate(t_parts).reshape(num_blocks * K, _SUBLANES, _LANES)

    elems = num_blocks * tile_elems
    bytes_in = elems * (p_all.dtype.itemsize + t_all.dtype.itemsize)
    bytes_out = 2 * num_blocks * _SUBLANES * _LANES * 4

    part_sum, part_cnt = pl.pallas_call(
        functools.partial(_masked_smooth_l1_kernel, ignore_val=ignore_val),
        out_shape=(
            jax.ShapeDtypeStruct((num_blocks, _SUBLANES, _LANES), jnp.float32),
            jax.ShapeDtypeStruct((num_blocks, _SUBLANES, _LANES), jnp.float32),
        ),
        grid=(num_blocks,),
        in_specs=[
            pl.BlockSpec((K, _SUBLANES, _LANES), lambda i: (i, 0, 0)),
            pl.BlockSpec((K, _SUBLANES, _LANES), lambda i: (i, 0, 0)),
        ],
        out_specs=(
            pl.BlockSpec((1, _SUBLANES, _LANES), lambda i: (i, 0, 0)),
            pl.BlockSpec((1, _SUBLANES, _LANES), lambda i: (i, 0, 0)),
        ),
        compiler_params=pltpu.CompilerParams(
            dimension_semantics=("parallel",),          # blocks are independent -> both TCs on v7x
            vmem_limit_bytes=32 * 1024 * 1024,
        ),
        cost_estimate=pl.CostEstimate(
            flops=8 * elems, transcendentals=0, bytes_accessed=bytes_in + bytes_out),
    )(p_all, t_all)

    # Per-scale finish (static slices over tiny (nblk, 8, 128) arrays).
    sums, cnts = [], []
    off = 0
    for nblk in blocks:
        sums.append(jnp.sum(part_sum[off:off + nblk]))
        cnts.append(jnp.sum(part_cnt[off:off + nblk]))
        off += nblk
    return sums, cnts


def ttd_loss(pred, target, ignore_value, multiscale_weights=(5, 6, 10)):
    """Pallas implementation of TTDLoss.forward. `pred` is a list of NCHW arrays."""
    ig = float(ignore_value) / 255.0

    flat_preds, flat_tgts = [], []
    for pred_ in pred:
        h, w = pred_.shape[2], pred_.shape[3]
        target_ = nearest_resize(target, h, w)   # gather glue, stays in JAX
        flat_preds.append(pred_.reshape(-1))     # native dtype, no wrapper astype
        flat_tgts.append(target_.reshape(-1))

    sums, cnts = _fused_masked_smooth_l1(flat_preds, flat_tgts, ig)

    l1_loss = jnp.float32(0.0)
    for s, c, weight in zip(sums, cnts, multiscale_weights):
        # TODO(synk): like the PyTorch reference, a scale with zero unmasked elements
        # yields NaN (mean over an empty selection); no guard is added on purpose.
        l1_loss = l1_loss + (s / c) * weight
    return {'l1_loss': l1_loss}


def ttd_loss_ref(pred, target, ignore_value, multiscale_weights=(5, 6, 10)):
    """Pure-JAX reference for verification."""
    ig = ignore_value / 255.0
    total = jnp.float32(0.0)
    for pred_, weight in zip(pred, multiscale_weights):
        h, w = pred_.shape[2], pred_.shape[3]
        target_ = nearest_resize(target, h, w)
        d = pred_ - target_
        ad = jnp.abs(d)
        l = jnp.where(ad < 1.0, 0.5 * d * d, ad - 0.5)
        mask = target_ != ig
        total = total + (jnp.sum(jnp.where(mask, l, 0.0)) /
                         jnp.sum(mask.astype(jnp.float32))) * weight
    return total


if __name__ == "__main__":
    key = jax.random.PRNGKey(0)
    k1, k2, k3, k4 = jax.random.split(key, 4)

    N, C, H, W = 2, 1, 16, 16
    # target values in {0.0, 0.5, 1.0}; pixels equal to 1.0 (= 255/255) are ignored.
    target = (jax.random.randint(k1, (N, C, H, W), 0, 3) / 2.0).astype(jnp.float32)
    preds = [
        0.5 * jax.random.normal(k2, (N, C, 16, 16), dtype=jnp.float32),
        0.5 * jax.random.normal(k3, (N, C, 8, 8), dtype=jnp.float32),
        0.5 * jax.random.normal(k4, (N, C, 4, 4), dtype=jnp.float32),
    ]
    ignore_value = 255

    loss = ttd_loss(preds, target, ignore_value)
    val = jax.block_until_ready(loss['l1_loss'])

    ref = ttd_loss_ref(preds, target, ignore_value)
    assert jnp.isfinite(val), val
    assert jnp.allclose(val, ref, rtol=1e-5, atol=1e-5), (val, ref)
    print("KERNEL_OK")
</pallas_src>

<mosaic_0001>
module attributes {stable_mosaic.version = 11 : i64} {
  func.func @_masked_smooth_l1_kernel(%arg0: i32, %arg1: memref<1x8x128xf32, #tpu.memory_space<vmem>>, %arg2: memref<1x8x128xf32, #tpu.memory_space<vmem>>, %arg3: memref<1x8x128xf32, #tpu.memory_space<vmem>>, %arg4: memref<1x8x128xf32, #tpu.memory_space<vmem>>) attributes {dimension_semantics = [#tpu.dimension_semantics<parallel>], iteration_bounds = array<i64: 3>, scalar_prefetch = 0 : i64, scratch_operands = 0 : i64, tpu.core_type = #tpu.core_type<tc>, window_params = [{transform_indices = @transform_0, window_bounds = array<i64: 1, 8, 128>}, {transform_indices = @transform_1, window_bounds = array<i64: 1, 8, 128>}, {transform_indices = @transform_2, window_bounds = array<i64: 1, 8, 128>}, {transform_indices = @transform_3, window_bounds = array<i64: 1, 8, 128>}]} {
    %c0 = arith.constant 0 : index
    %c0_0 = arith.constant 0 : index
    %c0_1 = arith.constant 0 : index
    %0 = vector.load %arg2[%c0, %c0_0, %c0_1] : memref<1x8x128xf32, #tpu.memory_space<vmem>>, vector<1x8x128xf32>
    %c0_2 = arith.constant 0 : index
    %c0_3 = arith.constant 0 : index
    %c0_4 = arith.constant 0 : index
    %1 = vector.load %arg1[%c0_2, %c0_3, %c0_4] : memref<1x8x128xf32, #tpu.memory_space<vmem>>, vector<1x8x128xf32>
    %2 = arith.subf %1, %0 : vector<1x8x128xf32>
    %3 = math.absf %2 : vector<1x8x128xf32>
    %cst = arith.constant 1.000000e+00 : f32
    %4 = vector.broadcast %cst : f32 to vector<1x8x128xf32>
    %5 = arith.cmpf olt, %3, %4 : vector<1x8x128xf32>
    %cst_5 = arith.constant 5.000000e-01 : f32
    %6 = vector.broadcast %cst_5 : f32 to vector<1x8x128xf32>
    %7 = arith.mulf %6, %2 : vector<1x8x128xf32>
    %8 = arith.mulf %7, %2 : vector<1x8x128xf32>
    %cst_6 = arith.constant 5.000000e-01 : f32
    %9 = vector.broadcast %cst_6 : f32 to vector<1x8x128xf32>
    %10 = arith.subf %3, %9 : vector<1x8x128xf32>
    %11 = arith.select %5, %8, %10 : vector<1x8x128xi1>, vector<1x8x128xf32>
    %cst_7 = arith.constant 1.000000e+00 : f32
    %12 = vector.broadcast %cst_7 : f32 to vector<1x8x128xf32>
    %13 = arith.cmpf one, %0, %12 : vector<1x8x128xf32>
    %cst_8 = arith.constant 0.000000e+00 : f32
    %14 = vector.broadcast %cst_8 : f32 to vector<1x8x128xf32>
    %15 = arith.select %13, %11, %14 : vector<1x8x128xi1>, vector<1x8x128xf32>
    %16 = arith.extui %13 : vector<1x8x128xi1> to vector<1x8x128xi32>
    %17 = arith.sitofp %16 : vector<1x8x128xi32> to vector<1x8x128xf32>
    %cst_9 = arith.constant dense<0.000000e+00> : vector<8x128xf32>
    %18 = vector.multi_reduction <add>, %15, %cst_9 [0] : vector<1x8x128xf32> to vector<8x128xf32>
    %c0_10 = arith.constant 0 : index
    %c0_11 = arith.constant 0 : index
    %c0_12 = arith.constant 0 : index
    %19 = vector.load %arg3[%c0_10, %c0_11, %c0_12] : memref<1x8x128xf32, #tpu.memory_space<vmem>>, vector<1x8x128xf32>
    %20 = vector.shape_cast %19 : vector<1x8x128xf32> to vector<8x128xf32>
    %21 = vector.shape_cast %18 : vector<8x128xf32> to vector<1x8x128xf32>
    tpu.vector_store %arg3[%c0_10, %c0_11, %c0_12], %21 {strides = array<i32>} : memref<1x8x128xf32, #tpu.memory_space<vmem>>, vector<1x8x128xf32>,
    %cst_13 = arith.constant dense<0.000000e+00> : vector<8x128xf32>
    %22 = vector.multi_reduction <add>, %17, %cst_13 [0] : vector<1x8x128xf32> to vector<8x128xf32>
    %c0_14 = arith.constant 0 : index
    %c0_15 = arith.constant 0 : index
    %c0_16 = arith.constant 0 : index
    %23 = vector.load %arg4[%c0_14, %c0_15, %c0_16] : memref<1x8x128xf32, #tpu.memory_space<vmem>>, vector<1x8x128xf32>
    %24 = vector.shape_cast %23 : vector<1x8x128xf32> to vector<8x128xf32>
    %25 = vector.shape_cast %22 : vector<8x128xf32> to vector<1x8x128xf32>
    tpu.vector_store %arg4[%c0_14, %c0_15, %c0_16], %25 {strides = array<i32>} : memref<1x8x128xf32, #tpu.memory_space<vmem>>, vector<1x8x128xf32>,
    return
  }
  func.func @transform_0(%arg0: i32) -> (i32, i32, i32) {
    %c0_i32 = arith.constant 0 : i32
    %c0_i32_0 = arith.constant 0 : i32
    %c0_i32_1 = arith.constant 0 : i32
    return %arg0, %c0_i32, %c0_i32_0 : i32, i32, i32
  }
  func.func @transform_1(%arg0: i32) -> (i32, i32, i32) {
    %c0_i32 = arith.constant 0 : i32
    %c0_i32_0 = arith.constant 0 : i32
    %c0_i32_1 = arith.constant 0 : i32
    return %arg0, %c0_i32, %c0_i32_0 : i32, i32, i32
  }
  func.func @transform_2(%arg0: i32) -> (i32, i32, i32) {
    %c0_i32 = arith.constant 0 : i32
    %c0_i32_0 = arith.constant 0 : i32
    %c0_i32_1 = arith.constant 0 : i32
    return %arg0, %c0_i32, %c0_i32_0 : i32, i32, i32
  }
  func.func @transform_3(%arg0: i32) -> (i32, i32, i32) {
    %c0_i32 = arith.constant 0 : i32
    %c0_i32_0 = arith.constant 0 : i32
    %c0_i32_1 = arith.constant 0 : i32
    return %arg0, %c0_i32, %c0_i32_0 : i32, i32, i32
  }
}

</mosaic_0001>

<bundles_post_ra>
// kernel: tpu_custom_call.1
= control target key start
LH: loop header
LB: loop body
LE: loop exit
PB: predicated region body
PF: predicated region fallthrough
CT: control target
= control target key end

     0   :  { %9 = vsyncpa [#allocation3], 0  ;;  %s867_s0 = inlined_call_operand.hbm [shape: f32[3,8,128], index: 0, kind: input, shape index: {}]   ;;  %s868_s1 = inlined_call_operand.hbm [shape: f32[3,8,128], index: 1, kind: input, shape index: {}]   ;;  %s869_s2 = inlined_call_operand.hbm [shape: f32[3,8,128], index: 2, kind: output, shape index: {0}]   ;;  %s870_s3 = inlined_call_operand.hbm [shape: f32[3,8,128], index: 3, kind: output, shape index: {1}]  }
   0x1   :  { %11 = vsyncpa [#allocation3 + $0x1], 0 }
   0x2   :  { %12 = vsyncpa [#allocation6], 0 }
   0x3   :  { %14 = vsyncpa [#allocation6 + $0x1], 0 }
   0x4   :  { %15 = vsyncpa [#allocation4], 0 }
   0x5   :  { %17 = vsyncpa [#allocation4 + $0x1], 0 }
   0x6   :  { %18 = vsyncpa [#allocation9], 0 }
   0x7   :  { %20 = vsyncpa [#allocation9 + $0x1], 0  ;;  %s678_s12 = smov 0   ;;  %s680_s13 = smov 0  }
   0x8   :  { %s682_s14 = smov 0   ;;  %s684_s15 = smov 0  }
   0x9 LB: > { %s699_s16 = sadd.s32 4294967295, %s655_s15   ;;  %s416_s17 = sadd.s32 4294967294, %s655_s15   ;;  %s655_s15 = sphi %s684_s15, %s880_s15   ;;  %s651_s14 = sphi %s682_s14, %s879_s14   ;;  %s647_s13 = sphi %s680_s13, %s878_s13   ;;  %s643_s12 = sphi %s678_s12, %s877_s12  }
   0xa   : > { %s703_s18 = sadd.s32 1, %s655_s15   ;;  %s33_s19 = sadd.s32 1, %s651_s14 }
   0xb   : > { %s30_s20 = ssub.s32 %s655_s15, %s703_s18  ;;  %p40_p0 = scmp.ne.s32.totalorder %s651_s14, %s647_s13 }
   0xc   : > { %p31_p1 = scmp.eq.s32.totalorder %s30_s20, 0  ;;  %p41_p2 = scmp.eq.s32.totalorder %s655_s15, 0 }
   0xd   : > { %p46_p3 = scmp.ne.s32.totalorder %s647_s13, %s643_s12  ;;  %p47_p4 = scmp.eq.s32.totalorder %s699_s16, 0 }
   0xe   : > { %s715_s21 = scalar_select %p31_p1, %s651_s14, %s33_s19  }
   0xf   : > { %p717_p5 = por %p41_p2, %p40_p0  ;;  %p721_p6 = por %p47_p4, %p46_p3 }
  0x10   : > { %p96_p7 = scmp.eq.s32.totalorder %s699_s16, 2  ;;  %p102_p8 = scmp.eq.s32.totalorder %s416_s17, 2 }
  0x11   : > { %p458_p9 = scmp.lt.s32.totalorder %s655_s15, 3  ;;  %s736_s26 = sand.u32 1, %s651_s14  }
  0x12   : > { %p727_p10 = por %p96_p7, %p40_p0  ;;  %p731_p11 = por %p102_p8, %p46_p3 }
  0x13   : > { %s420_s27 = sshll.u32 %s655_s15, 3  ;;  %s419_s28 = sshll.u32 %s736_s26, 3 }
  0x14   : > { %s156_s4 = scalar_lea.hbm %s867_s0, %s420_s27  ;;  %s152_s6 = scalar_lea.vmem [#allocation2], %s419_s28 }
  0x15   : > { %s158_s5 = sshll.u32 %s156_s4, 4  ;;  %s160_s7 = sshll.u32 %s152_s6, 4  ;;  %s159_s5 = int_to_ptr.hbm [resolvable:$true] %s158_s5  ;;  %s161_s7 = int_to_ptr.vmem [resolvable:$true] %s160_s7 }
  0x16   : > { %p745_p12 = pnand %p458_p9, %p717_p5  ;;  %p423_p13 = scmp.ge.s32.totalorder %s655_s15, 1 }
  0x17   : > { %p184_p0 = scmp.lt.s32.totalorder %s655_s15, 4  ;;  %s149_s9 = scalar_lea.sflag [#allocation3], %s736_s26 }
  0x18   : > { %s493_s10 = sshra.s32 %s159_s5, 4  ;;  %p497_p2 = pneg %p745_p12  ;;  %s494_s10 = int_to_ptr.hbm [resolvable:$true] %s493_s10 }
  0x19   : > { %s495_s11 = scalar_lea.hbm %s494_s10, 8  ;;  %s500_s20 = scalar_lea.hbm %s867_s0, 24 }
  0x1a   : > { %p496_p1 = scmp.ne.s32.totalorder %s494_s10, %s495_s11  ;;  %p501_p5 = scmp.lt.s32.totalorder %s494_s10, %s867_s0 }
  0x1b   : > { %p502_p7 = scmp.lt.s32.totalorder %s500_s20, %s495_s11 }
  0x1c   : > { %p498_p3 = pnand %p497_p2, %p496_p1 }
  0x1d   : > { %p503_p8 = por %p502_p7, %p501_p5 }
  0x1e   : > { %p499_p4 = pneg %p498_p3 }
  0x20   : > { %p504_p9 = pnand %p503_p8, %p499_p4 }
  0x22   : > { %507 = shalt.err (!%p504_p9)
}
  0x23   : > { %447 = dma.hbm_to_vmem [thread:$0]  (!%p745_p12), %s159_s5, 128, %s161_s7, %s149_s9  }
  0x24   : > { %p769_p1 = pnand %p423_p13, %p184_p0  ;;  %s175_s10 = scalar_lea.hbm %s868_s1, %s420_s27 }
  0x25   : > { %s177_s11 = sshll.u32 %s175_s10, 4  ;;  %s171_s17 = scalar_lea.vmem [#allocation5], %s419_s28  ;;  %s178_s11 = int_to_ptr.hbm [resolvable:$true] %s177_s11 }
  0x26   : > { %s179_s19 = sshll.u32 %s171_s17, 4  ;;  %s168_s20 = scalar_lea.sflag [#allocation6], %s736_s26  ;;  %s180_s19 = int_to_ptr.vmem [resolvable:$true] %s179_s19 }
  0x27   : > { %s523_s22 = sshra.s32 %s178_s11, 4  ;;  %s530_s9 = scalar_lea.hbm %s868_s1, 24  ;;  %s524_s22 = int_to_ptr.hbm [resolvable:$true] %s523_s22 }
  0x28   : > { %s525_s29 = scalar_lea.hbm %s524_s22, 8  ;;  %p531_p4 = scmp.lt.s32.totalorder %s524_s22, %s868_s1 }
  0x29   : > { %p526_p3 = scmp.ne.s32.totalorder %s524_s22, %s525_s29  ;;  %p532_p5 = scmp.lt.s32.totalorder %s530_s9, %s525_s29 }
  0x2b   : > { %p528_p13 = pnand %p526_p3, %p497_p2  ;;  %p533_p7 = por %p532_p5, %p531_p4 }
  0x2d   : > { %p529_p0 = pneg %p528_p13 }
  0x2f   : > { %p534_p8 = pnand %p533_p7, %p529_p0 }
  0x31   : > { %537 = shalt.err (!%p534_p8)
}
  0x32   : > { %450 = dma.hbm_to_vmem [thread:$0]  (!%p745_p12), %s178_s11, 128, %s180_s19, %s168_s20  }
  0x33   : > { %188 = sbr.rel (%p769_p1) target bundleno = 88 (0x58), region = 28  ;;  %s791_s26 = sand.u32 (!%p769_p1), 1, %s647_s13  }
  0x34   : > { %s794_s28 = sshll.u32 (!%p769_p1), %s791_s26, 3  ;;  %s191_s6 = scalar_lea.sflag (!%p769_p1), [#allocation3], %s791_s26 }
  0x35   : > { %s194_s10 = scalar_lea.vmem (!%p769_p1), [#allocation2], %s794_s28 }
  0x38   : > { %626 = dma.done.wait (%p721_p6), %s191_s6, 128  }
  0x39   : > { %628 = vsyncadd (%p721_p6), %s191_s6, 4294967168  ;;  %s201_s8 = scalar_lea.sflag [#allocation6], %s791_s26  ;;  %s204_s30 = scalar_lea.vmem [#allocation5], %s794_s28 }
  0x3a   : > { %630 = dma.done.wait (%p721_p6), %s201_s8, 128  }
  0x3b   : > { %632 = vsyncadd (%p721_p6), %s201_s8, 4294967168  ;;  %s432_s11 = sshll.u32 %s699_s16, 3  ;;  %s237_s17 = scalar_lea.vmem [#allocation8], %s794_s28  ;;  %v238_v0 = vld [vmem:[%s204_s30] sm:$0xff]  ;;  %v239_v1 = vld [vmem:[%s194_s10] sm:$0xff]  ;;  %v657_v3 = vmov 0.0  }
  0x3c   : > { %s810_s19 = sshll.u32 %s237_s17, 4  ;;  %s285_s29 = scalar_lea.hbm %s870_s3, %s432_s11  ;;  %v240_v2 = vsub.f32 %v239_v1, %v238_v0  ;;  %vm247_vm0 = vcmp.ne.f32.partialorder %v238_v0, 1.0  ;;  %s288_s19 = int_to_ptr.vmem [resolvable:$true] %s810_s19 }
  0x3d   : > { %s289_s5 = sshll.u32 %s285_s29, 4  ;;  %s819_s9 = scalar_lea.hbm %s869_s2, %s432_s11  ;;  %v429_v4 = vsel %vm247_vm0, 1.0, %v657_v3  ;;  %s290_s5 = int_to_ptr.hbm [resolvable:$true] %s289_s5 }
  0x3e   : > { %v241_v5 = vand.u32 2147483647, %v240_v2  ;;  %v243_v6 = vmul.f32 0.5, %v240_v2  ;;  %s230_s16 = scalar_lea.vmem [#allocation7], %s794_s28  ;;  %254 = vst [vmem:[%s237_s17] sm:$0xff] %v429_v4  ;;  %s275_s27 = sshll.u32 %s819_s9, 4  ;;  %s276_s27 = int_to_ptr.hbm [resolvable:$true] %s275_s27 }
  0x3f   : > { %s823_s4 = sshll.u32 %s230_s16, 4  ;;  %s261_s6 = scalar_lea.sflag [#allocation9], %s791_s26  ;;  %s274_s4 = int_to_ptr.vmem [resolvable:$true] %s823_s4 }
  0x40   : > { %s567_s10 = sshra.s32 %s290_s5, 4  ;;  %s573_s20 = scalar_lea.hbm %s870_s3, 24  ;;  %s568_s10 = int_to_ptr.hbm [resolvable:$true] %s567_s10 }
  0x41   : > { %s569_s8 = scalar_lea.hbm %s568_s10, 8  ;;  %p574_p9 = scmp.lt.s32.totalorder %s568_s10, %s870_s3 }
  0x42   : > { %p570_p6 = scmp.ne.s32.totalorder %s568_s10, %s569_s8  ;;  %p575_p1 = scmp.lt.s32.totalorder %s573_s20, %s569_s8 }
  0x44   : > { %p571_p12 = pnand %p570_p6, %p727_p10  ;;  %p576_p3 = por %p575_p1, %p574_p9 }
  0x46   : > { %p572_p2 = pneg %p571_p12 }
  0x48   : > { %p577_p13 = pnand %p576_p3, %p572_p2 }
  0x4a   : > { %580 = shalt.err (!%p577_p13)
}
  0x4b   : > { %441 = dma.vmem_to_hbm [thread:$0]  (%p727_p10), %s288_s19, 128, %s290_s5, %s261_s6   ;;  %vm242_vm1 = vcmp.lt.f32.partialorder %v241_v5, 1.0  ;;  %v244_v7 = vmul.f32 %v243_v6, %v240_v2  ;;  %v428_v8 = vadd.f32 -0.5, %v241_v5 }
  0x4c   : > { %s256_s28 = scalar_lea.sflag [#allocation4], %s791_s26  ;;  %s595_s17 = sshra.s32 %s276_s27, 4  ;;  %s596_s17 = int_to_ptr.hbm [resolvable:$true] %s595_s17 }
  0x4d   : > { %v246_v9 = vsel %vm242_vm1, %v244_v7, %v428_v8  ;;  %s597_s7 = scalar_lea.hbm %s596_s17, 8  ;;  %s601_s19 = scalar_lea.hbm %s869_s2, 24 }
  0x4e   : > { %v248_v10 = vsel %vm247_vm0, %v246_v9, 0.0  ;;  %p598_p0 = scmp.ne.s32.totalorder %s596_s17, %s597_s7  ;;  %p602_p7 = scmp.lt.s32.totalorder %s596_s17, %s869_s2 }
  0x4f   : > { %252 = vst [vmem:[%s230_s16] sm:$0xff] %v248_v10  ;;  %p603_p8 = scmp.lt.s32.totalorder %s601_s19, %s597_s7 }
  0x50   : > { %p599_p4 = pnand %p598_p0, %p727_p10 }
  0x51   : > { %p604_p6 = por %p603_p8, %p602_p7 }
  0x52   : > { %p600_p5 = pneg %p599_p4 }
  0x54   : > { %p605_p12 = pnand %p604_p6, %p600_p5 }
  0x56   : > { %608 = shalt.err (!%p605_p12)
}
  0x57   : > { %440 = dma.vmem_to_hbm [thread:$0]  (%p727_p10), %s274_s4, 128, %s276_s27, %s256_s28  }
  0x58 PF: > { %p459_p2 = scmp.ge.s32.totalorder %s655_s15, 2  ;;  %s301_s26 = sand.u32 1, %s643_s12  }
  0x59   : > { %s302_s16 = scalar_lea.sflag [#allocation4], %s301_s26 }
  0x5a   : > { %p452_p9 = pnand %p459_p2, %p731_p11 }
  0x5c   : > { %p453_p1 = pneg %p452_p9 }
  0x5e   : > { %634 = dma.done.wait (%p453_p1), %s302_s16, 128  }
  0x5f   : > { %636 = vsyncadd (%p453_p1), %s302_s16, 4294967168  ;;  %s312_s10 = scalar_lea.sflag [#allocation9], %s301_s26 }
  0x60   : > { %638 = dma.done.wait (%p453_p1), %s312_s10, 128  }
  0x61   : > { %640 = vsyncadd (%p453_p1), %s312_s10, 4294967168  ;;  %p23_p10 = scmp.ge.s32.totalorder %s703_s18, 5   ;;  %s877_s12 = smov %s647_s13 }
  0x62   : > { %s878_s13 = smov %s651_s14  ;;  %s879_s14 = smov %s715_s21 }
  0x63   : > { %s880_s15 = smov %s703_s18  ;;  %25 = sbr.rel (!%p23_p10) target bundleno = 9 (0x9), region = 103 }
  0x68   :  { %318 = vsyncpa [#allocation3], 1 }
  0x69   :  { %320 = vsyncpa [#allocation3 + $0x1], 1 }
  0x6a   :  { %321 = vsyncpa [#allocation6], 1 }
  0x6b   :  { %323 = vsyncpa [#allocation6 + $0x1], 1 }
  0x6c   :  { %324 = vsyncpa [#allocation4], 1 }
  0x6d   :  { %326 = vsyncpa [#allocation4 + $0x1], 1 }
  0x6e   :  { %327 = vsyncpa [#allocation9], 1 }
  0x6f   :  { %329 = vsyncpa [#allocation9 + $0x1], 1 }

</bundles_post_ra>
